<compile_context>
chip_gen: v7x
topology: tpu7x:2x2x1
jax: 0.10.0
libtpu: 0.0.40
codegen_flags: <defaults>
</compile_context>

<pallas_src>
import functools

import numpy as np
import jax
import jax.numpy as jnp
from jax import lax
from jax.experimental import pallas as pl
from jax.experimental.pallas import tpu as pltpu

EPS = 0.01        # self.eps in the PyTorch module
HIDDEN = 8        # hidden width of the stand-in illumination net
_SSIM_WIN = 11
_SSIM_C1 = 0.01 ** 2
_SSIM_C2 = 0.03 ** 2


# --------------------------------------------------------------------------
# Host-side helpers
# --------------------------------------------------------------------------
def _gauss_taps(size=_SSIM_WIN, sigma=1.5):
    coords = np.arange(size, dtype=np.float64) - size // 2
    g = np.exp(-(coords ** 2) / (2.0 * sigma ** 2))
    g = g / g.sum()
    return tuple(float(v) for v in g)   # baked into the kernels as constants


def _round_up_lanes(w):
    """Pad W to a multiple of 128 lanes, strictly greater than W.

    The zero columns at [W, Wp) provide the 3x3 conv's left/right zero halo when we
    shift with pltpu.roll, so Wp must be strictly larger than W.
    """
    wp = ((w + 127) // 128) * 128
    if wp == w:
        wp += 128
    return wp


# --------------------------------------------------------------------------
# In-kernel helpers (traced; fully unrolled)
# --------------------------------------------------------------------------
def _rgb_to_y(rgb_ref):
    """kornia rgb_to_ycbcr, Y channel.  rgb_ref block: (1, 3, H, Wp)."""
    r = rgb_ref[0, 0]
    g = rgb_ref[0, 1]
    b = rgb_ref[0, 2]
    return 0.299 * r + 0.587 * g + 0.114 * b


def _conv3x3_vpu(x_planes, w_ref, b_ref, cin, cout, H, rows, lane_ok, act):
    """3x3 'same' conv as VPU shifted multiply-accumulates (no MXU, no relayouts).

    x_planes : list of cin (H, Wp) f32 planes whose columns >= W are exactly zero.
    w_ref    : flat SMEM ref of 9*cin*cout taps, index = ((ky*3+kx)*cin+ci)*cout+co.
    b_ref    : flat SMEM ref of cout biases.
    Returns a list of cout (H, Wp) planes with columns >= W re-zeroed (invariant kept
    for the next layer).
    """
    Wp = x_planes[0].shape[-1]
    acc = [None] * cout
    for ci in range(cin):
        x = x_planes[ci]
        # Row shifts first (out[h] = x[h + dy]) with zero-row masks, then lane shifts
        # (out[w] = x[w + dx]); the zero pad columns supply the left/right halo.
        row_sh = {
            -1: jnp.where(rows >= 1, pltpu.roll(x, 1, axis=0), 0.0),
             0: x,
             1: jnp.where(rows < H - 1, pltpu.roll(x, H - 1, axis=0), 0.0),
        }
        for dy in (-1, 0, 1):
            base = row_sh[dy]
            lane_sh = {
                -1: pltpu.roll(base, 1, axis=1),
                 0: base,
                 1: pltpu.roll(base, Wp - 1, axis=1),
            }
            for dx in (-1, 0, 1):
                sh = lane_sh[dx]
                tap_base = (((dy + 1) * 3 + (dx + 1)) * cin + ci) * cout
                for co in range(cout):
                    term = w_ref[tap_base + co] * sh          # scalar tap * plane
                    acc[co] = term if acc[co] is None else acc[co] + term
    out = []
    for co in range(cout):
        a = acc[co] + b_ref[co]
        if act == "relu":
            a = jnp.maximum(a, 0.0)
        elif act == "sigmoid":
            a = jax.nn.sigmoid(a)
        out.append(jnp.where(lane_ok, a, 0.0))                # restore zero dead zone
    return out


def _gauss11_valid(x, taps, H):
    """Separable 11x11 Gaussian (valid conv, left-anchored).  x: (H, Wp).

    Output is only meaningful on rows [0, H-10) and cols [0, W-10); wrapped roll
    values land outside that region and are masked by the caller.  The Gaussian is
    symmetric, so paired shifts share one multiply.
    """
    Wp = x.shape[-1]
    mid = _SSIM_WIN // 2
    # horizontal pass (lanes): out[w] = sum_j taps[j] * x[w + j]
    hs = [x] + [pltpu.roll(x, (Wp - j) % Wp, axis=1) for j in range(1, _SSIM_WIN)]
    h = taps[mid] * hs[mid]
    for j in range(mid):
        h = h + taps[j] * (hs[j] + hs[_SSIM_WIN - 1 - j])
    # vertical pass (sublanes): out[h] = sum_i taps[i] * h[h + i]
    vs = [h] + [pltpu.roll(h, (H - i) % H, axis=0) for i in range(1, _SSIM_WIN)]
    v = taps[mid] * vs[mid]
    for i in range(mid):
        v = v + taps[i] * (vs[i] + vs[_SSIM_WIN - 1 - i])
    return v


# --------------------------------------------------------------------------
# Kernel 1: GT statistics (run once per distinct GT image)
# --------------------------------------------------------------------------
def _gt_stats_kernel(rgb_ref, y_ref, mu_ref, e2_ref, *, H, gtaps):
    y = _rgb_to_y(rgb_ref)                 # zero in the padded columns already
    y_ref[0] = y
    mu_ref[0] = _gauss11_valid(y, gtaps, H)
    e2_ref[0] = _gauss11_valid(y * y, gtaps, H)


def _gt_stats(gt_p, *, H, Wp, gtaps):
    Ngt = gt_p.shape[0]
    kern = functools.partial(_gt_stats_kernel, H=H, gtaps=gtaps)
    plane = jax.ShapeDtypeStruct((Ngt, H, Wp), jnp.float32)
    return pl.pallas_call(
        kern,
        out_shape=(plane, plane, plane),
        grid=(Ngt,),
        in_specs=[pl.BlockSpec((1, 3, H, Wp), lambda i: (i, 0, 0, 0))],
        out_specs=(
            pl.BlockSpec((1, H, Wp), lambda i: (i, 0, 0)),
            pl.BlockSpec((1, H, Wp), lambda i: (i, 0, 0)),
            pl.BlockSpec((1, H, Wp), lambda i: (i, 0, 0)),
        ),
        compiler_params=pltpu.CompilerParams(dimension_semantics=("parallel",)),
    )(gt_p)


# --------------------------------------------------------------------------
# Kernel 2: fused per-image forward: Y, 3-layer conv net, texture_out, loss partials
# --------------------------------------------------------------------------
def _fused_kernel(rgb_ref, gty_ref, gtmu_ref, gte2_ref,
                  w1_ref, b1_ref, w2_ref, b2_ref, w3_ref, b3_ref,
                  t_ref, ill_ref, sq_ref, ssim_ref,
                  *, H, W, Wp, hidden, gtaps):
    # iotas hoisted once (JAX does not CSE broadcast_in_dim)
    rows = lax.broadcasted_iota(jnp.int32, (H, Wp), 0)
    cols = lax.broadcasted_iota(jnp.int32, (H, Wp), 1)
    lane_ok = cols < W

    # ---- RGB -> Y (kornia Y coefficients) ---------------------------------
    y = _rgb_to_y(rgb_ref)                                    # (H, Wp), zero for w >= W

    # ---- illumination net: 1 -> hidden -> hidden -> 1 ---------------------
    h1 = _conv3x3_vpu([y], w1_ref, b1_ref, 1, hidden, H, rows, lane_ok, "relu")
    h2 = _conv3x3_vpu(h1, w2_ref, b2_ref, hidden, hidden, H, rows, lane_ok, "relu")
    h3 = _conv3x3_vpu(h2, w3_ref, b3_ref, hidden, 1, H, rows, lane_ok, "sigmoid")
    ill = h3[0]
    ill_ref[0] = ill

    # ---- texture_out = Y / clamp_min(ill, eps)  (reciprocal on the EUP) ----
    t = y * pl.reciprocal(jnp.maximum(ill, EPS), approx=True)
    t = jnp.where(lane_ok, t, 0.0)
    t_ref[0] = t

    gt = gty_ref[0]

    # ---- MSE partial sum (both t and gt are zero in the padded columns) ----
    diff = t - gt
    sq_ref[...] = jnp.full((1, 8, 128), jnp.sum(diff * diff), jnp.float32)

    # ---- SSIM partial sum (11x11 Gaussian, valid conv, data range 1.0) -----
    mu1 = _gauss11_valid(t, gtaps, H)
    e11 = _gauss11_valid(t * t, gtaps, H)
    e12 = _gauss11_valid(t * gt, gtaps, H)
    mu2 = gtmu_ref[0]
    e22 = gte2_ref[0]

    mu1s = mu1 * mu1
    mu2s = mu2 * mu2
    mu12 = mu1 * mu2
    num = (2.0 * mu12 + _SSIM_C1) * (2.0 * (e12 - mu12) + _SSIM_C2)
    den = (mu1s + mu2s + _SSIM_C1) * ((e11 - mu1s) + (e22 - mu2s) + _SSIM_C2)

    valid = (rows < H - (_SSIM_WIN - 1)) & (cols < W - (_SSIM_WIN - 1))
    den = jnp.where(valid, den, 1.0)
    ssim_map = num / den
    ssim_ref[...] = jnp.full((1, 8, 128),
                             jnp.sum(jnp.where(valid, ssim_map, 0.0)), jnp.float32)


def _fused_forward(img_p, gt_y, gt_mu, gt_e2, flat_params, *, H, W, Wp, gtaps):
    N = img_p.shape[0]
    Ngt = gt_y.shape[0]
    if Ngt == 1:
        gt_map = lambda i: (0, 0, 0)      # GT block stays resident across the batch
    else:
        gt_map = lambda i: (i, 0, 0)

    smem = lambda: pl.BlockSpec(memory_space=pltpu.MemorySpace.SMEM)
    kern = functools.partial(_fused_kernel, H=H, W=W, Wp=Wp, hidden=HIDDEN, gtaps=gtaps)

    return pl.pallas_call(
        kern,
        out_shape=(
            jax.ShapeDtypeStruct((N, H, Wp), jnp.float32),   # texture_out (lane padded)
            jax.ShapeDtypeStruct((N, H, Wp), jnp.float32),   # illumination (lane padded)
            jax.ShapeDtypeStruct((N, 8, 128), jnp.float32),  # per-image sum((t-gt)^2)
            jax.ShapeDtypeStruct((N, 8, 128), jnp.float32),  # per-image sum(ssim_map)
        ),
        grid=(N,),
        in_specs=[
            pl.BlockSpec((1, 3, H, Wp), lambda i: (i, 0, 0, 0)),
            pl.BlockSpec((1, H, Wp), gt_map),
            pl.BlockSpec((1, H, Wp), gt_map),
            pl.BlockSpec((1, H, Wp), gt_map),
            smem(), smem(), smem(), smem(), smem(), smem(),
        ],
        out_specs=(
            pl.BlockSpec((1, H, Wp), lambda i: (i, 0, 0)),
            pl.BlockSpec((1, H, Wp), lambda i: (i, 0, 0)),
            pl.BlockSpec((1, 8, 128), lambda i: (i, 0, 0)),
            pl.BlockSpec((1, 8, 128), lambda i: (i, 0, 0)),
        ),
        compiler_params=pltpu.CompilerParams(
            dimension_semantics=("parallel",),            # per-image independent work
            vmem_limit_bytes=32 * 1024 * 1024,
        ),
    )(img_p, gt_y, gt_mu, gt_e2, *flat_params)


# --------------------------------------------------------------------------
# Parameters of the stand-in illumination net
# --------------------------------------------------------------------------
def init_params(key):
    k1, k2, k3 = jax.random.split(key, 3)
    return {
        "w1": 0.1 * jax.random.normal(k1, (3, 3, 1, HIDDEN), jnp.float32),
        "b1": jnp.zeros((HIDDEN,), jnp.float32),
        "w2": 0.1 * jax.random.normal(k2, (3, 3, HIDDEN, HIDDEN), jnp.float32),
        "b2": jnp.zeros((HIDDEN,), jnp.float32),
        "w3": 0.1 * jax.random.normal(k3, (3, 3, HIDDEN, 1), jnp.float32),
        "b3": jnp.zeros((1,), jnp.float32),
    }


# --------------------------------------------------------------------------
# ModelINet.forward
# --------------------------------------------------------------------------
def model_inet_forward(image, image_gt, params, training=True):
    if training:
        image = jnp.squeeze(image, axis=0)       # (B, 3, H, W)
        # image_gt.repeat(8,1,1,1) is replaced by computing GT stats once and
        # broadcasting them across the batch inside the loss kernel (same loss value).
    image = image.astype(jnp.float32)
    image_gt = image_gt.astype(jnp.float32)

    N, _, H, W = image.shape
    Wp = _round_up_lanes(W)
    gtaps = _gauss_taps()

    # one-time lane pad (zeros beyond W) -- lane-dense layout for every kernel block
    pad = ((0, 0), (0, 0), (0, 0), (0, Wp - W))
    img_p = jnp.pad(image, pad)
    gt_p = jnp.pad(image_gt, pad)

    gt_y, gt_mu, gt_e2 = _gt_stats(gt_p, H=H, Wp=Wp, gtaps=gtaps)

    flat_params = (
        params["w1"].reshape(-1).astype(jnp.float32),
        params["b1"].reshape(-1).astype(jnp.float32),
        params["w2"].reshape(-1).astype(jnp.float32),
        params["b2"].reshape(-1).astype(jnp.float32),
        params["w3"].reshape(-1).astype(jnp.float32),
        params["b3"].reshape(-1).astype(jnp.float32),
    )

    t_p, ill_p, sq_part, ssim_part = _fused_forward(
        img_p, gt_y, gt_mu, gt_e2, flat_params, H=H, W=W, Wp=Wp, gtaps=gtaps)

    # final tiny reductions in plain JAX (per-image partials -> scalars)
    hv = H - (_SSIM_WIN - 1)
    wv = W - (_SSIM_WIN - 1)
    mse = jnp.sum(sq_part[:, 0, 0]) / (N * H * W)
    mean_ssim = jnp.sum(ssim_part[:, 0, 0]) / (N * hv * wv)
    l2_ssim_loss = mse + 1.2 * (1.0 - mean_ssim)

    texture_out = t_p[:, :, :W][:, None, :, :]   # back to NCHW (N, 1, H, W)
    illumi = ill_p[:, :, :W][:, None, :, :]
    return texture_out, illumi, l2_ssim_loss


if __name__ == "__main__":
    key = jax.random.PRNGKey(0)
    k_img, k_gt, k_par = jax.random.split(key, 3)

    # training-mode shapes: image (1, 8, 3, H, W) -> squeeze(0); image_gt (1, 3, H, W)
    image = jax.random.uniform(k_img, (1, 8, 3, 16, 16), jnp.float32)
    image_gt = jax.random.uniform(k_gt, (1, 3, 16, 16), jnp.float32)
    params = init_params(k_par)

    texture_out, illumi, loss = model_inet_forward(image, image_gt, params, training=True)
    jax.block_until_ready((texture_out, illumi, loss))

    assert texture_out.shape == (8, 1, 16, 16)
    assert illumi.shape == (8, 1, 16, 16)
    assert loss.shape == ()
    assert bool(jnp.isfinite(loss))
    print("KERNEL_OK")
</pallas_src>

<mosaic_0001>
module attributes {stable_mosaic.version = 11 : i64} {
  func.func @_gt_stats_kernel(%arg0: i32, %arg1: memref<1x3x16x128xf32, #tpu.memory_space<vmem>>, %arg2: memref<1x16x128xf32, #tpu.memory_space<vmem>>, %arg3: memref<1x16x128xf32, #tpu.memory_space<vmem>>, %arg4: memref<1x16x128xf32, #tpu.memory_space<vmem>>) attributes {dimension_semantics = [#tpu.dimension_semantics<parallel>], iteration_bounds = array<i64: 1>, scalar_prefetch = 0 : i64, scratch_operands = 0 : i64, tpu.core_type = #tpu.core_type<tc>, window_params = [{transform_indices = @transform_0, window_bounds = array<i64: 1, 3, 16, 128>}, {transform_indices = @transform_1, window_bounds = array<i64: 1, 16, 128>}, {transform_indices = @transform_2, window_bounds = array<i64: 1, 16, 128>}, {transform_indices = @transform_3, window_bounds = array<i64: 1, 16, 128>}]} {
    %c0 = arith.constant 0 : index
    %c0_0 = arith.constant 0 : index
    %c0_1 = arith.constant 0 : index
    %c0_2 = arith.constant 0 : index
    %0 = vector.load %arg1[%c0, %c0_0, %c0_1, %c0_2] : memref<1x3x16x128xf32, #tpu.memory_space<vmem>>, vector<1x1x16x128xf32>
    %1 = vector.shape_cast %0 : vector<1x1x16x128xf32> to vector<16x128xf32>
    %c0_3 = arith.constant 0 : index
    %c1 = arith.constant 1 : index
    %c0_4 = arith.constant 0 : index
    %c0_5 = arith.constant 0 : index
    %2 = vector.load %arg1[%c0_3, %c1, %c0_4, %c0_5] : memref<1x3x16x128xf32, #tpu.memory_space<vmem>>, vector<1x1x16x128xf32>
    %3 = vector.shape_cast %2 : vector<1x1x16x128xf32> to vector<16x128xf32>
    %c0_6 = arith.constant 0 : index
    %c2 = arith.constant 2 : index
    %c0_7 = arith.constant 0 : index
    %c0_8 = arith.constant 0 : index
    %4 = vector.load %arg1[%c0_6, %c2, %c0_7, %c0_8] : memref<1x3x16x128xf32, #tpu.memory_space<vmem>>, vector<1x1x16x128xf32>
    %5 = vector.shape_cast %4 : vector<1x1x16x128xf32> to vector<16x128xf32>
    %cst = arith.constant 2.990000e-01 : f32
    %6 = vector.broadcast %cst : f32 to vector<16x128xf32>
    %7 = arith.mulf %6, %1 : vector<16x128xf32>
    %cst_9 = arith.constant 5.870000e-01 : f32
    %8 = vector.broadcast %cst_9 : f32 to vector<16x128xf32>
    %9 = arith.mulf %8, %3 : vector<16x128xf32>
    %10 = arith.addf %7, %9 : vector<16x128xf32>
    %cst_10 = arith.constant 1.140000e-01 : f32
    %11 = vector.broadcast %cst_10 : f32 to vector<16x128xf32>
    %12 = arith.mulf %11, %5 : vector<16x128xf32>
    %13 = arith.addf %10, %12 : vector<16x128xf32>
    %c0_11 = arith.constant 0 : index
    %c0_12 = arith.constant 0 : index
    %c0_13 = arith.constant 0 : index
    %14 = vector.load %arg2[%c0_11, %c0_12, %c0_13] : memref<1x16x128xf32, #tpu.memory_space<vmem>>, vector<1x16x128xf32>
    %15 = vector.shape_cast %14 : vector<1x16x128xf32> to vector<16x128xf32>
    %16 = vector.shape_cast %13 : vector<16x128xf32> to vector<1x16x128xf32>
    tpu.vector_store %arg2[%c0_11, %c0_12, %c0_13], %16 {strides = array<i32>} : memref<1x16x128xf32, #tpu.memory_space<vmem>>, vector<1x16x128xf32>,
    %c127_i32 = arith.constant 127 : i32
    %17 = tpu.dynamic_rotate %13 by %c127_i32 dim 1 : vector<16x128xf32>, i32 -> vector<16x128xf32>
    %c126_i32 = arith.constant 126 : i32
    %18 = tpu.dynamic_rotate %13 by %c126_i32 dim 1 : vector<16x128xf32>, i32 -> vector<16x128xf32>
    %c125_i32 = arith.constant 125 : i32
    %19 = tpu.dynamic_rotate %13 by %c125_i32 dim 1 : vector<16x128xf32>, i32 -> vector<16x128xf32>
    %c124_i32 = arith.constant 124 : i32
    %20 = tpu.dynamic_rotate %13 by %c124_i32 dim 1 : vector<16x128xf32>, i32 -> vector<16x128xf32>
    %c123_i32 = arith.constant 123 : i32
    %21 = tpu.dynamic_rotate %13 by %c123_i32 dim 1 : vector<16x128xf32>, i32 -> vector<16x128xf32>
    %c122_i32 = arith.constant 122 : i32
    %22 = tpu.dynamic_rotate %13 by %c122_i32 dim 1 : vector<16x128xf32>, i32 -> vector<16x128xf32>
    %c121_i32 = arith.constant 121 : i32
    %23 = tpu.dynamic_rotate %13 by %c121_i32 dim 1 : vector<16x128xf32>, i32 -> vector<16x128xf32>
    %c120_i32 = arith.constant 120 : i32
    %24 = tpu.dynamic_rotate %13 by %c120_i32 dim 1 : vector<16x128xf32>, i32 -> vector<16x128xf32>
    %c119_i32 = arith.constant 119 : i32
    %25 = tpu.dynamic_rotate %13 by %c119_i32 dim 1 : vector<16x128xf32>, i32 -> vector<16x128xf32>
    %c118_i32 = arith.constant 118 : i32
    %26 = tpu.dynamic_rotate %13 by %c118_i32 dim 1 : vector<16x128xf32>, i32 -> vector<16x128xf32>
    %cst_14 = arith.constant 0.266011715 : f32
    %27 = vector.broadcast %cst_14 : f32 to vector<16x128xf32>
    %28 = arith.mulf %27, %21 : vector<16x128xf32>
    %29 = arith.addf %13, %26 : vector<16x128xf32>
    %cst_15 = arith.constant 0.00102838012 : f32
    %30 = vector.broadcast %cst_15 : f32 to vector<16x128xf32>
    %31 = arith.mulf %30, %29 : vector<16x128xf32>
    %32 = arith.addf %28, %31 : vector<16x128xf32>
    %33 = arith.addf %17, %25 : vector<16x128xf32>
    %cst_16 = arith.constant 0.00759875821 : f32
    %34 = vector.broadcast %cst_16 : f32 to vector<16x128xf32>
    %35 = arith.mulf %34, %33 : vector<16x128xf32>
    %36 = arith.addf %32, %35 : vector<16x128xf32>
    %37 = arith.addf %18, %24 : vector<16x128xf32>
    %cst_17 = arith.constant 0.0360007733 : f32
    %38 = vector.broadcast %cst_17 : f32 to vector<16x128xf32>
    %39 = arith.mulf %38, %37 : vector<16x128xf32>
    %40 = arith.addf %36, %39 : vector<16x128xf32>
    %41 = arith.addf %19, %23 : vector<16x128xf32>
    %cst_18 = arith.constant 0.109360687 : f32
    %42 = vector.broadcast %cst_18 : f32 to vector<16x128xf32>
    %43 = arith.mulf %42, %41 : vector<16x128xf32>
    %44 = arith.addf %40, %43 : vector<16x128xf32>
    %45 = arith.addf %20, %22 : vector<16x128xf32>
    %cst_19 = arith.constant 0.213005543 : f32
    %46 = vector.broadcast %cst_19 : f32 to vector<16x128xf32>
    %47 = arith.mulf %46, %45 : vector<16x128xf32>
    %48 = arith.addf %44, %47 : vector<16x128xf32>
    %c15_i32 = arith.constant 15 : i32
    %49 = tpu.dynamic_rotate %48 by %c15_i32 dim 0 : vector<16x128xf32>, i32 -> vector<16x128xf32>
    %c14_i32 = arith.constant 14 : i32
    %50 = tpu.dynamic_rotate %48 by %c14_i32 dim 0 : vector<16x128xf32>, i32 -> vector<16x128xf32>
    %c13_i32 = arith.constant 13 : i32
    %51 = tpu.dynamic_rotate %48 by %c13_i32 dim 0 : vector<16x128xf32>, i32 -> vector<16x128xf32>
    %c12_i32 = arith.constant 12 : i32
    %52 = tpu.dynamic_rotate %48 by %c12_i32 dim 0 : vector<16x128xf32>, i32 -> vector<16x128xf32>
    %c11_i32 = arith.constant 11 : i32
    %53 = tpu.dynamic_rotate %48 by %c11_i32 dim 0 : vector<16x128xf32>, i32 -> vector<16x128xf32>
    %c10_i32 = arith.constant 10 : i32
    %54 = tpu.dynamic_rotate %48 by %c10_i32 dim 0 : vector<16x128xf32>, i32 -> vector<16x128xf32>
    %c9_i32 = arith.constant 9 : i32
    %55 = tpu.dynamic_rotate %48 by %c9_i32 dim 0 : vector<16x128xf32>, i32 -> vector<16x128xf32>
    %c8_i32 = arith.constant 8 : i32
    %56 = tpu.dynamic_rotate %48 by %c8_i32 dim 0 : vector<16x128xf32>, i32 -> vector<16x128xf32>
    %c7_i32 = arith.constant 7 : i32
    %57 = tpu.dynamic_rotate %48 by %c7_i32 dim 0 : vector<16x128xf32>, i32 -> vector<16x128xf32>
    %c6_i32 = arith.constant 6 : i32
    %58 = tpu.dynamic_rotate %48 by %c6_i32 dim 0 : vector<16x128xf32>, i32 -> vector<16x128xf32>
    %cst_20 = arith.constant 0.266011715 : f32
    %59 = vector.broadcast %cst_20 : f32 to vector<16x128xf32>
    %60 = arith.mulf %59, %53 : vector<16x128xf32>
    %61 = arith.addf %48, %58 : vector<16x128xf32>
    %cst_21 = arith.constant 0.00102838012 : f32
    %62 = vector.broadcast %cst_21 : f32 to vector<16x128xf32>
    %63 = arith.mulf %62, %61 : vector<16x128xf32>
    %64 = arith.addf %60, %63 : vector<16x128xf32>
    %65 = arith.addf %49, %57 : vector<16x128xf32>
    %cst_22 = arith.constant 0.00759875821 : f32
    %66 = vector.broadcast %cst_22 : f32 to vector<16x128xf32>
    %67 = arith.mulf %66, %65 : vector<16x128xf32>
    %68 = arith.addf %64, %67 : vector<16x128xf32>
    %69 = arith.addf %50, %56 : vector<16x128xf32>
    %cst_23 = arith.constant 0.0360007733 : f32
    %70 = vector.broadcast %cst_23 : f32 to vector<16x128xf32>
    %71 = arith.mulf %70, %69 : vector<16x128xf32>
    %72 = arith.addf %68, %71 : vector<16x128xf32>
    %73 = arith.addf %51, %55 : vector<16x128xf32>
    %cst_24 = arith.constant 0.109360687 : f32
    %74 = vector.broadcast %cst_24 : f32 to vector<16x128xf32>
    %75 = arith.mulf %74, %73 : vector<16x128xf32>
    %76 = arith.addf %72, %75 : vector<16x128xf32>
    %77 = arith.addf %52, %54 : vector<16x128xf32>
    %cst_25 = arith.constant 0.213005543 : f32
    %78 = vector.broadcast %cst_25 : f32 to vector<16x128xf32>
    %79 = arith.mulf %78, %77 : vector<16x128xf32>
    %80 = arith.addf %76, %79 : vector<16x128xf32>
    %c0_26 = arith.constant 0 : index
    %c0_27 = arith.constant 0 : index
    %c0_28 = arith.constant 0 : index
    %81 = vector.load %arg3[%c0_26, %c0_27, %c0_28] : memref<1x16x128xf32, #tpu.memory_space<vmem>>, vector<1x16x128xf32>
    %82 = vector.shape_cast %81 : vector<1x16x128xf32> to vector<16x128xf32>
    %83 = vector.shape_cast %80 : vector<16x128xf32> to vector<1x16x128xf32>
    tpu.vector_store %arg3[%c0_26, %c0_27, %c0_28], %83 {strides = array<i32>} : memref<1x16x128xf32, #tpu.memory_space<vmem>>, vector<1x16x128xf32>,
    %84 = arith.mulf %13, %13 : vector<16x128xf32>
    %c127_i32_29 = arith.constant 127 : i32
    %85 = tpu.dynamic_rotate %84 by %c127_i32_29 dim 1 : vector<16x128xf32>, i32 -> vector<16x128xf32>
    %c126_i32_30 = arith.constant 126 : i32
    %86 = tpu.dynamic_rotate %84 by %c126_i32_30 dim 1 : vector<16x128xf32>, i32 -> vector<16x128xf32>
    %c125_i32_31 = arith.constant 125 : i32
    %87 = tpu.dynamic_rotate %84 by %c125_i32_31 dim 1 : vector<16x128xf32>, i32 -> vector<16x128xf32>
    %c124_i32_32 = arith.constant 124 : i32
    %88 = tpu.dynamic_rotate %84 by %c124_i32_32 dim 1 : vector<16x128xf32>, i32 -> vector<16x128xf32>
    %c123_i32_33 = arith.constant 123 : i32
    %89 = tpu.dynamic_rotate %84 by %c123_i32_33 dim 1 : vector<16x128xf32>, i32 -> vector<16x128xf32>
    %c122_i32_34 = arith.constant 122 : i32
    %90 = tpu.dynamic_rotate %84 by %c122_i32_34 dim 1 : vector<16x128xf32>, i32 -> vector<16x128xf32>
    %c121_i32_35 = arith.constant 121 : i32
    %91 = tpu.dynamic_rotate %84 by %c121_i32_35 dim 1 : vector<16x128xf32>, i32 -> vector<16x128xf32>
    %c120_i32_36 = arith.constant 120 : i32
    %92 = tpu.dynamic_rotate %84 by %c120_i32_36 dim 1 : vector<16x128xf32>, i32 -> vector<16x128xf32>
    %c119_i32_37 = arith.constant 119 : i32
    %93 = tpu.dynamic_rotate %84 by %c119_i32_37 dim 1 : vector<16x128xf32>, i32 -> vector<16x128xf32>
    %c118_i32_38 = arith.constant 118 : i32
    %94 = tpu.dynamic_rotate %84 by %c118_i32_38 dim 1 : vector<16x128xf32>, i32 -> vector<16x128xf32>
    %cst_39 = arith.constant 0.266011715 : f32
    %95 = vector.broadcast %cst_39 : f32 to vector<16x128xf32>
    %96 = arith.mulf %95, %89 : vector<16x128xf32>
    %97 = arith.addf %84, %94 : vector<16x128xf32>
    %cst_40 = arith.constant 0.00102838012 : f32
    %98 = vector.broadcast %cst_40 : f32 to vector<16x128xf32>
    %99 = arith.mulf %98, %97 : vector<16x128xf32>
    %100 = arith.addf %96, %99 : vector<16x128xf32>
    %101 = arith.addf %85, %93 : vector<16x128xf32>
    %cst_41 = arith.constant 0.00759875821 : f32
    %102 = vector.broadcast %cst_41 : f32 to vector<16x128xf32>
    %103 = arith.mulf %102, %101 : vector<16x128xf32>
    %104 = arith.addf %100, %103 : vector<16x128xf32>
    %105 = arith.addf %86, %92 : vector<16x128xf32>
    %cst_42 = arith.constant 0.0360007733 : f32
    %106 = vector.broadcast %cst_42 : f32 to vector<16x128xf32>
    %107 = arith.mulf %106, %105 : vector<16x128xf32>
    %108 = arith.addf %104, %107 : vector<16x128xf32>
    %109 = arith.addf %87, %91 : vector<16x128xf32>
    %cst_43 = arith.constant 0.109360687 : f32
    %110 = vector.broadcast %cst_43 : f32 to vector<16x128xf32>
    %111 = arith.mulf %110, %109 : vector<16x128xf32>
    %112 = arith.addf %108, %111 : vector<16x128xf32>
    %113 = arith.addf %88, %90 : vector<16x128xf32>
    %cst_44 = arith.constant 0.213005543 : f32
    %114 = vector.broadcast %cst_44 : f32 to vector<16x128xf32>
    %115 = arith.mulf %114, %113 : vector<16x128xf32>
    %116 = arith.addf %112, %115 : vector<16x128xf32>
    %c15_i32_45 = arith.constant 15 : i32
    %117 = tpu.dynamic_rotate %116 by %c15_i32_45 dim 0 : vector<16x128xf32>, i32 -> vector<16x128xf32>
    %c14_i32_46 = arith.constant 14 : i32
    %118 = tpu.dynamic_rotate %116 by %c14_i32_46 dim 0 : vector<16x128xf32>, i32 -> vector<16x128xf32>
    %c13_i32_47 = arith.constant 13 : i32
    %119 = tpu.dynamic_rotate %116 by %c13_i32_47 dim 0 : vector<16x128xf32>, i32 -> vector<16x128xf32>
    %c12_i32_48 = arith.constant 12 : i32
    %120 = tpu.dynamic_rotate %116 by %c12_i32_48 dim 0 : vector<16x128xf32>, i32 -> vector<16x128xf32>
    %c11_i32_49 = arith.constant 11 : i32
    %121 = tpu.dynamic_rotate %116 by %c11_i32_49 dim 0 : vector<16x128xf32>, i32 -> vector<16x128xf32>
    %c10_i32_50 = arith.constant 10 : i32
    %122 = tpu.dynamic_rotate %116 by %c10_i32_50 dim 0 : vector<16x128xf32>, i32 -> vector<16x128xf32>
    %c9_i32_51 = arith.constant 9 : i32
    %123 = tpu.dynamic_rotate %116 by %c9_i32_51 dim 0 : vector<16x128xf32>, i32 -> vector<16x128xf32>
    %c8_i32_52 = arith.constant 8 : i32
    %124 = tpu.dynamic_rotate %116 by %c8_i32_52 dim 0 : vector<16x128xf32>, i32 -> vector<16x128xf32>
    %c7_i32_53 = arith.constant 7 : i32
    %125 = tpu.dynamic_rotate %116 by %c7_i32_53 dim 0 : vector<16x128xf32>, i32 -> vector<16x128xf32>
    %c6_i32_54 = arith.constant 6 : i32
    %126 = tpu.dynamic_rotate %116 by %c6_i32_54 dim 0 : vector<16x128xf32>, i32 -> vector<16x128xf32>
    %cst_55 = arith.constant 0.266011715 : f32
    %127 = vector.broadcast %cst_55 : f32 to vector<16x128xf32>
    %128 = arith.mulf %127, %121 : vector<16x128xf32>
    %129 = arith.addf %116, %126 : vector<16x128xf32>
    %cst_56 = arith.constant 0.00102838012 : f32
    %130 = vector.broadcast %cst_56 : f32 to vector<16x128xf32>
    %131 = arith.mulf %130, %129 : vector<16x128xf32>
    %132 = arith.addf %128, %131 : vector<16x128xf32>
    %133 = arith.addf %117, %125 : vector<16x128xf32>
    %cst_57 = arith.constant 0.00759875821 : f32
    %134 = vector.broadcast %cst_57 : f32 to vector<16x128xf32>
    %135 = arith.mulf %134, %133 : vector<16x128xf32>
    %136 = arith.addf %132, %135 : vector<16x128xf32>
    %137 = arith.addf %118, %124 : vector<16x128xf32>
    %cst_58 = arith.constant 0.0360007733 : f32
    %138 = vector.broadcast %cst_58 : f32 to vector<16x128xf32>
    %139 = arith.mulf %138, %137 : vector<16x128xf32>
    %140 = arith.addf %136, %139 : vector<16x128xf32>
    %141 = arith.addf %119, %123 : vector<16x128xf32>
    %cst_59 = arith.constant 0.109360687 : f32
    %142 = vector.broadcast %cst_59 : f32 to vector<16x128xf32>
    %143 = arith.mulf %142, %141 : vector<16x128xf32>
    %144 = arith.addf %140, %143 : vector<16x128xf32>
    %145 = arith.addf %120, %122 : vector<16x128xf32>
    %cst_60 = arith.constant 0.213005543 : f32
    %146 = vector.broadcast %cst_60 : f32 to vector<16x128xf32>
    %147 = arith.mulf %146, %145 : vector<16x128xf32>
    %148 = arith.addf %144, %147 : vector<16x128xf32>
    %c0_61 = arith.constant 0 : index
    %c0_62 = arith.constant 0 : index
    %c0_63 = arith.constant 0 : index
    %149 = vector.load %arg4[%c0_61, %c0_62, %c0_63] : memref<1x16x128xf32, #tpu.memory_space<vmem>>, vector<1x16x128xf32>
    %150 = vector.shape_cast %149 : vector<1x16x128xf32> to vector<16x128xf32>
    %151 = vector.shape_cast %148 : vector<16x128xf32> to vector<1x16x128xf32>
    tpu.vector_store %arg4[%c0_61, %c0_62, %c0_63], %151 {strides = array<i32>} : memref<1x16x128xf32, #tpu.memory_space<vmem>>, vector<1x16x128xf32>,
    return
  }
  func.func @transform_0(%arg0: i32) -> (i32, i32, i32, i32) {
    %c0_i32 = arith.constant 0 : i32
    %c0_i32_0 = arith.constant 0 : i32
    %c0_i32_1 = arith.constant 0 : i32
    %c0_i32_2 = arith.constant 0 : i32
    return %arg0, %c0_i32, %c0_i32_0, %c0_i32_1 : i32, i32, i32, i32
  }
  func.func @transform_1(%arg0: i32) -> (i32, i32, i32) {
    %c0_i32 = arith.constant 0 : i32
    %c0_i32_0 = arith.constant 0 : i32
    %c0_i32_1 = arith.constant 0 : i32
    return %arg0, %c0_i32, %c0_i32_0 : i32, i32, i32
  }
  func.func @transform_2(%arg0: i32) -> (i32, i32, i32) {
    %c0_i32 = arith.constant 0 : i32
    %c0_i32_0 = arith.constant 0 : i32
    %c0_i32_1 = arith.constant 0 : i32
    return %arg0, %c0_i32, %c0_i32_0 : i32, i32, i32
  }
  func.func @transform_3(%arg0: i32) -> (i32, i32, i32) {
    %c0_i32 = arith.constant 0 : i32
    %c0_i32_0 = arith.constant 0 : i32
    %c0_i32_1 = arith.constant 0 : i32
    return %arg0, %c0_i32, %c0_i32_0 : i32, i32, i32
  }
}

</mosaic_0001>

<bundles_post_ra>
// kernel: tpu_custom_call.1
= control target key start
LH: loop header
LB: loop body
LE: loop exit
PB: predicated region body
PF: predicated region fallthrough
CT: control target
= control target key end

     0   :  { %9 = vsyncpa [#allocation3], 0  ;;  %s715_s0 = inlined_call_operand.hbm [shape: f32[1,3,16,128], index: 0, kind: input, shape index: {}]   ;;  %s716_s1 = inlined_call_operand.hbm [shape: f32[1,16,128], index: 1, kind: output, shape index: {0}]   ;;  %s717_s2 = inlined_call_operand.hbm [shape: f32[1,16,128], index: 2, kind: output, shape index: {1}]   ;;  %s718_s3 = inlined_call_operand.hbm [shape: f32[1,16,128], index: 3, kind: output, shape index: {2}]  }
   0x1   :  { %10 = vsyncpa [#allocation4], 0 }
   0x2   :  { %11 = vsyncpa [#allocation7], 0  ;;  %s476_s12 = smov [#allocation2]   ;;  %s382_s16 = scalar_lea.hbm %s715_s0, 768 }
   0x3   :  { %s17_s13 = sshll.u32 %s476_s12, 4  ;;  %p383_p0 = scmp.ne.s32.totalorder %s715_s0, %s382_s16  ;;  %s18_s13 = int_to_ptr.vmem [resolvable:$true] %s17_s13 }
   0x4   :  { %p386_p1 = scmp.lt.u32.totalorder %s382_s16, %s715_s0 }
   0x6   :  { %p388_p2 = pnand %p386_p1, %p383_p0 }
   0x8   :  { %391 = shalt.err (!%p388_p2)
}
   0x9   :  { %s392_s21 = scalar_lea.vmem %s18_s13, 768  ;;  %p397_p4 = scmp.lt.s32.totalorder %s18_s13, %s18_s13 }
   0xa   :  { %p393_p3 = scmp.ne.s32.totalorder %s18_s13, %s392_s21  ;;  %p398_p5 = scmp.lt.s32.totalorder %s392_s21, %s392_s21 }
   0xc   :  { %p399_p6 = por %p398_p5, %p397_p4 }
   0xe   :  { %p400_p7 = pnand %p399_p6, %p393_p3 }
  0x10   :  { %403 = shalt.err (!%p400_p7)
}
  0x11   :  { %s477_s22 = smov 128   ;;  %s478_s23 = smov 8  }
  0x12   :  { %23 = dma.hbm_to_vmem [thread:$0]  %s715_s0, 768, %s18_s13, [#allocation3], %s477_s22, %s477_s22, %s478_s23  }
  0x13   :  { %470 = dma.done.wait [#allocation3], 768  }
  0x14   :  { %471 = vsyncadd [#allocation3], 4294966528  ;;  %v28_v0 = vld [vmem:[#allocation2 + $0x8] sm:$0xff]  ;;  %v31_v1 = vld [vmem:[#allocation2 + $0x18] sm:$0xff]  ;;  %s479_s26 = smov 127   ;;  %s480_s0 = smov 118  }
  0x15   :  { %v34_v2 = vld [vmem:[#allocation2 + $0x28] sm:$0xff]  ;;  %v36_v3 = vmul.f32 0.299, %v28_v0  ;;  %v38_v4 = vmul.f32 0.587, %v31_v1  ;;  %v27_v6 = vld [vmem:[#allocation2] sm:$0xff] }
  0x16   :  { %v42_v5 = vmul.f32 0.114, %v34_v2  ;;  %v30_v7 = vld [vmem:[#allocation2 + $0x10] sm:$0xff]  ;;  %v33_v8 = vld [vmem:[#allocation2 + $0x20] sm:$0xff]  ;;  %v35_v10 = vmul.f32 0.299, %v27_v6 }
  0x17   :  { %v40_v9 = vadd.f32 %v38_v4, %v36_v3  ;;  %v37_v11 = vmul.f32 0.587, %v30_v7  ;;  %v41_v12 = vmul.f32 0.114, %v33_v8  ;;  %s481_s27 = smov 123   ;;  %s482_s28 = smov 119  }
  0x18   :  { %s483_s29 = smov 126   ;;  %s484_s30 = smov 120  }
  0x19   :  { %v527_v13 = vadd.f32 %v42_v5, %v40_v9  ;;  %v39_v14 = vadd.f32 %v37_v11, %v35_v10  ;;  %s485_s4 = smov 125   ;;  %s486_s5 = smov 121  }
  0x1a   :  { %s487_s6 = smov 124   ;;  %s488_s7 = smov 122  }
  0x1b   :  { %49 = vrot.lane.b32.xlu1 %v527_v13, %s479_s26  ;;  %46 = vst [vmem:[#allocation5 + $0x8] sm:$0xff] %v527_v13  ;;  %v531_v15 = vadd.f32 %v41_v12, %v39_v14  ;;  %v546_v17 = vmul.f32 %v527_v13, %v527_v13  ;;  %s489_s8 = smov [#allocation5]  }
  0x1c   :  { %s323_s9 = sshll.u32 %s489_s8, 4  ;;  %s324_s9 = int_to_ptr.vmem [resolvable:$true] %s323_s9 }
  0x1d   :  { %83 = vrot.lane.b32.xlu0 %v531_v15, %s480_s0  ;;  %45 = vst [vmem:[#allocation5] sm:$0xff] %v531_v15  ;;  %v540_v16 = vmul.f32 %v531_v15, %v531_v15  ;;  %s404_s10 = scalar_lea.vmem %s324_s9, 256  ;;  %p409_p9 = scmp.lt.s32.totalorder %s324_s9, %s324_s9 }
  0x1e   :  { %p405_p8 = scmp.ne.s32.totalorder %s324_s9, %s404_s10  ;;  %p410_p10 = scmp.lt.s32.totalorder %s404_s10, %s404_s10 }
  0x1f   :  { %65 = vrot.lane.b32.xlu1 %v527_v13, %s481_s27 }
  0x20   :  { %p411_p11 = por %p410_p10, %p409_p9 }
  0x21   :  { %85 = vrot.lane.b32.xlu0 %v527_v13, %s480_s0 }
  0x22   :  { %p412_p12 = pnand %p411_p11, %p405_p8 }
  0x23   :  { %81 = vrot.lane.b32.xlu1 %v527_v13, %s482_s28 }
  0x25   :  { %47 = vrot.lane.b32.xlu0 %v531_v15, %s479_s26 }
  0x27   :  { %224 = vrot.lane.b32.xlu1 %v540_v16, %s480_s0 }
  0x29   :  { %63 = vrot.lane.b32.xlu0 %v531_v15, %s481_s27 }
  0x2b   :  { %226 = vrot.lane.b32.xlu1 %v546_v17, %s480_s0 }
  0x2d   :  { %79 = vrot.lane.b32.xlu0 %v531_v15, %s482_s28 }
  0x2f   :  { %190 = vrot.lane.b32.xlu1 %v546_v17, %s479_s26 }
  0x31   :  { %188 = vrot.lane.b32.xlu0 %v540_v16, %s479_s26 }
  0x33   :  { %206 = vrot.lane.b32.xlu1 %v546_v17, %s481_s27 }
  0x35   :  { %204 = vrot.lane.b32.xlu0 %v540_v16, %s481_s27 }
  0x37   :  { %222 = vrot.lane.b32.xlu1 %v546_v17, %s482_s28 }
  0x39   :  { %220 = vrot.lane.b32.xlu0 %v540_v16, %s482_s28 }
  0x3b   :  { %53 = vrot.lane.b32.xlu1 %v527_v13, %s483_s29 }
  0x3d   :  { %51 = vrot.lane.b32.xlu0 %v531_v15, %s483_s29 }
  0x3f   :  { %77 = vrot.lane.b32.xlu1 %v527_v13, %s484_s30 }
  0x41   :  { %75 = vrot.lane.b32.xlu0 %v531_v15, %s484_s30 }
  0x43   :  { %194 = vrot.lane.b32.xlu1 %v546_v17, %s483_s29 }
  0x45   :  { %192 = vrot.lane.b32.xlu0 %v540_v16, %s483_s29 }
  0x47   :  { %218 = vrot.lane.b32.xlu1 %v546_v17, %s484_s30 }
  0x49   :  { %216 = vrot.lane.b32.xlu0 %v540_v16, %s484_s30 }
  0x4b   :  { %57 = vrot.lane.b32.xlu1 %v527_v13, %s485_s4 }
  0x4d   :  { %55 = vrot.lane.b32.xlu0 %v531_v15, %s485_s4 }
  0x4f   :  { %73 = vrot.lane.b32.xlu1 %v527_v13, %s486_s5 }
  0x51   :  { %71 = vrot.lane.b32.xlu0 %v531_v15, %s486_s5 }
  0x53   :  { %198 = vrot.lane.b32.xlu1 %v546_v17, %s485_s4 }
  0x55   :  { %196 = vrot.lane.b32.xlu0 %v540_v16, %s485_s4 }
  0x57   :  { %214 = vrot.lane.b32.xlu1 %v546_v17, %s486_s5 }
  0x59   :  { %212 = vrot.lane.b32.xlu0 %v540_v16, %s486_s5 }
  0x5b   :  { %61 = vrot.lane.b32.xlu1 %v527_v13, %s487_s6 }
  0x5d   :  { %59 = vrot.lane.b32.xlu0 %v531_v15, %s487_s6 }
  0x5f   :  { %69 = vrot.lane.b32.xlu1 %v527_v13, %s488_s7 }
  0x61   :  { %67 = vrot.lane.b32.xlu0 %v531_v15, %s488_s7 }
  0x63   :  { %202 = vrot.lane.b32.xlu1 %v546_v17, %s487_s6 }
  0x65   :  { %200 = vrot.lane.b32.xlu0 %v540_v16, %s487_s6 }
  0x67   :  { %210 = vrot.lane.b32.xlu1 %v546_v17, %s488_s7 }
  0x69   :  { %208 = vrot.lane.b32.xlu0 %v540_v16, %s488_s7 }
  0x6a   :  { %415 = shalt.err (!%p412_p12)
}
  0x6b   :  { %s416_s13 = scalar_lea.hbm %s716_s1, 256 }
  0x6c   :  { %p417_p13 = scmp.ne.s32.totalorder %s716_s1, %s416_s13  ;;  %p420_p0 = scmp.lt.u32.totalorder %s416_s13, %s716_s1 }
  0x6e   :  { %p422_p1 = pnand %p420_p0, %p417_p13 }
  0x70   :  { %425 = shalt.err (!%p422_p1)
}
  0x71   :  { %329 = dma.vmem_to_hbm [thread:$0]  %s324_s9, 256, %s716_s1, [#allocation4], %s477_s22, %s477_s22, %s478_s23   ;;  %v121_v55 = vlaneseq }
  0x72   :  { %s490_s1 = smov [#allocation6]  }
  0x73   :  { %v600_v5 = vshrl.u32 %v121_v55, 7  ;;  %s335_s20 = sshll.u32 %s490_s1, 4  ;;  %s336_s20 = int_to_ptr.vmem [resolvable:$true] %s335_s20 }
  0x74   :  { %s426_s21 = scalar_lea.vmem %s336_s20, 256  ;;  %p431_p3 = scmp.lt.s32.totalorder %s336_s20, %s336_s20 }
  0x75   :  { %vm123_vm0 = vcmp.lt.s32.totalorder %v600_v5, 7  ;;  %vm128_vm1 = vcmp.lt.s32.totalorder %v600_v5, 6  ;;  %vm133_vm2 = vcmp.lt.s32.totalorder %v600_v5, 5  ;;  %vm138_vm3 = vcmp.lt.s32.totalorder %v600_v5, 4  ;;  %p427_p2 = scmp.ne.s32.totalorder %s336_s20, %s426_s21  ;;  %p432_p4 = scmp.lt.s32.totalorder %s426_s21, %s426_s21 }
  0x76   :  { %vm143_vm4 = vcmp.lt.s32.totalorder %v600_v5, 3  ;;  %vm148_vm5 = vcmp.lt.s32.totalorder %v600_v5, 2  ;;  %vm153_vm6 = vcmp.lt.s32.totalorder %v600_v5, 1 }
  0x77   :  { %p433_p5 = por %p432_p4, %p431_p3 }
  0x79   :  { %p434_p6 = pnand %p433_p5, %p427_p2 }
  0x8d   :  { %v50_v18 = vpop.permute.xlu1 %49 }
  0x8f   :  { %v84_v19 = vpop.permute.xlu0 %83 }
  0x90   :  { %v89_v49 = vadd.f32 %v84_v19, %v531_v15 }
  0x91   :  { %v66_v20 = vpop.permute.xlu1 %65 }
  0x92   :  { %v88_v52 = vmul.f32 0.26601171, %v66_v20  ;;  %v91_v59 = vmul.f32 0.0010283801, %v89_v49 }
  0x93   :  { %v86_v21 = vpop.permute.xlu0 %85 }
  0x94   :  { %v90_v45 = vadd.f32 %v86_v21, %v527_v13 }
  0x95   :  { %v82_v22 = vpop.permute.xlu1 %81 }
  0x96   :  { %v96_v47 = vadd.f32 %v82_v22, %v50_v18  ;;  %v92_v50 = vmul.f32 0.0010283801, %v90_v45 }
  0x97   :  { %v48_v23 = vpop.permute.xlu0 %47 }
  0x98   :  { %v98_v53 = vmul.f32 0.007598758, %v96_v47  ;;  %v94_v60 = vadd.f32 %v92_v50, %v88_v52 }
  0x99   :  { %v225_v24 = vpop.permute.xlu1 %224 }
  0x9a   :  { %v100_v2 = vadd.f32 %v98_v53, %v94_v60  ;;  %v230_v4 = vadd.f32 %v225_v24, %v540_v16 }
  0x9b   :  { %v64_v25 = vpop.permute.xlu0 %63 }
  0x9c   :  { %v87_v54 = vmul.f32 0.26601171, %v64_v25  ;;  %v232_v21 = vmul.f32 0.0010283801, %v230_v4 }
  0x9d   :  { %v227_v26 = vpop.permute.xlu1 %226 }
  0x9e   :  { %v231_v61 = vadd.f32 %v227_v26, %v546_v17  ;;  %v93_v3 = vadd.f32 %v91_v59, %v87_v54 }
  0x9f   :  { %v80_v27 = vpop.permute.xlu0 %79 }
  0xa0   :  { %v95_v56 = vadd.f32 %v80_v27, %v48_v23  ;;  %v233_v11 = vmul.f32 0.0010283801, %v231_v61 }
  0xa1   :  { %v191_v28 = vpop.permute.xlu1 %190 }
  0xa2   :  { %v97_v6 = vmul.f32 0.007598758, %v95_v56 }
  0xa3   :  { %v189_v29 = vpop.permute.xlu0 %188 }
  0xa4   :  { %v99_v23 = vadd.f32 %v97_v6, %v93_v3 }
  0xa5   :  { %v207_v30 = vpop.permute.xlu1 %206 }
  0xa6   :  { %v229_v7 = vmul.f32 0.26601171, %v207_v30 }
  0xa7   :  { %v205_v31 = vpop.permute.xlu0 %204 }
  0xa8   :  { %v228_v12 = vmul.f32 0.26601171, %v205_v31  ;;  %v235_v16 = vadd.f32 %v233_v11, %v229_v7 }
  0xa9   :  { %v223_v32 = vpop.permute.xlu1 %222 }
  0xaa   :  { %v237_v62 = vadd.f32 %v223_v32, %v191_v28  ;;  %v234_v27 = vadd.f32 %v232_v21, %v228_v12 }
  0xab   :  { %v221_v33 = vpop.permute.xlu0 %220 }
  0xac   :  { %v236_v8 = vadd.f32 %v221_v33, %v189_v29  ;;  %v239_v15 = vmul.f32 0.007598758, %v237_v62 }
  0xad   :  { %v54_v34 = vpop.permute.xlu1 %53 }
  0xae   :  { %v238_v24 = vmul.f32 0.007598758, %v236_v8  ;;  %v241_v31 = vadd.f32 %v239_v15, %v235_v16 }
  0xaf   :  { %v52_v35 = vpop.permute.xlu0 %51 }
  0xb1   :  { %v78_v36 = vpop.permute.xlu1 %77 }
  0xb2   :  { %v102_v57 = vadd.f32 %v78_v36, %v54_v34 }
  0xb3   :  { %v76_v37 = vpop.permute.xlu0 %75 }
  0xb4   :  { %v101_v63 = vadd.f32 %v76_v37, %v52_v35  ;;  %v104_v9 = vmul.f32 0.036000773, %v102_v57 }
  0xb5   :  { %v195_v38 = vpop.permute.xlu1 %194 }
  0xb6   :  { %v103_v17 = vmul.f32 0.036000773, %v101_v63  ;;  %v106_v25 = vadd.f32 %v104_v9, %v100_v2 }
  0xb7   :  { %v193_v39 = vpop.permute.xlu0 %192 }
  0xb8   :  { %v105_v32 = vadd.f32 %v103_v17, %v99_v23 }
  0xb9   :  { %v219_v40 = vpop.permute.xlu1 %218 }
  0xba   :  { %v243_v13 = vadd.f32 %v219_v40, %v195_v38  ;;  %v240_v40 = vadd.f32 %v238_v24, %v234_v27 }
  0xbb   :  { %v217_v41 = vpop.permute.xlu0 %216 }
  0xbc   :  { %v242_v18 = vadd.f32 %v217_v41, %v193_v39  ;;  %v245_v28 = vmul.f32 0.036000773, %v243_v13 }
  0xbd   :  { %v58_v42 = vpop.permute.xlu1 %57 }
  0xbe   :  { %v244_v33 = vmul.f32 0.036000773, %v242_v18 }
  0xbf   :  { %v56_v43 = vpop.permute.xlu0 %55 }
  0xc1   :  { %v74_v44 = vpop.permute.xlu1 %73 }
  0xc2   :  { %v108_v0 = vadd.f32 %v74_v44, %v58_v42  ;;  %v247_v42 = vadd.f32 %v245_v28, %v241_v31 }
  0xc3   :  { %v72_v46 = vpop.permute.xlu0 %71 }
  0xc4   :  { %v107_v14 = vadd.f32 %v72_v46, %v56_v43  ;;  %v110_v19 = vmul.f32 0.10936069, %v108_v0  ;;  %v246_v46 = vadd.f32 %v244_v33, %v240_v40 }
  0xc5   :  { %v199_v48 = vpop.permute.xlu1 %198 }
  0xc6   :  { %v109_v29 = vmul.f32 0.10936069, %v107_v14  ;;  %v112_v34 = vadd.f32 %v110_v19, %v106_v25 }
  0xc7   :  { %v197_v51 = vpop.permute.xlu0 %196 }
  0xc8   :  { %v111_v43 = vadd.f32 %v109_v29, %v105_v32 }
  0xc9   :  { %v215_v58 = vpop.permute.xlu1 %214 }
  0xca   :  { %v249_v22 = vadd.f32 %v215_v58, %v199_v48 }
  0xcb   :  { %v213_v1 = vpop.permute.xlu0 %212 }
  0xcc   :  { %v248_v36 = vadd.f32 %v213_v1, %v197_v51  ;;  %v251_v37 = vmul.f32 0.10936069, %v249_v22 }
  0xcd   :  { %v62_v10 = vpop.permute.xlu1 %61 }
  0xce   :  { %v250_v48 = vmul.f32 0.10936069, %v248_v36  ;;  %v253_v49 = vadd.f32 %v251_v37, %v247_v42 }
  0xcf   :  { %v60_v20 = vpop.permute.xlu0 %59 }
  0xd0   :  { %v252_v7 = vadd.f32 %v250_v48, %v246_v46 }
  0xd1   :  { %v70_v26 = vpop.permute.xlu1 %69 }
  0xd2   :  { %v114_v30 = vadd.f32 %v70_v26, %v62_v10 }
  0xd3   :  { %v68_v35 = vpop.permute.xlu0 %67 }
  0xd4   :  { %v113_v38 = vadd.f32 %v68_v35, %v60_v20  ;;  %v116_v39 = vmul.f32 0.21300554, %v114_v30 }
  0xd5   :  { %v203_v41 = vpop.permute.xlu1 %202 }
  0xd6   :  { %v115_v44 = vmul.f32 0.21300554, %v113_v38  ;;  %v118_v45 = vadd.f32 %v116_v39, %v112_v34 }
  0xd7   :  { %v201_v47 = vpop.permute.xlu0 %200 }
  0xd8   :  { %v117_v50 = vadd.f32 %v115_v44, %v111_v43  ;;  %v120_v51 = vrot.slane %v118_v45, 1  ;;  %v127_v53 = vrot.slane %v118_v45, 2  ;;  %v132_v54 = vrot.slane %v118_v45, 3 }
  0xd9   :  { %v211_v52 = vpop.permute.xlu1 %210  ;;  %v137_v55 = vrot.slane %v118_v45, 4  ;;  %v142_v56 = vrot.slane %v118_v45, 5  ;;  %v147_v0 = vrot.slane %v118_v45, 6  ;;  %v152_v1 = vrot.slane %v118_v45, 7 }
  0xda   :  { %v255_v57 = vadd.f32 %v211_v52, %v203_v41  ;;  %v119_v58 = vrot.slane %v117_v50, 1  ;;  %v126_v59 = vrot.slane %v117_v50, 2  ;;  %v131_v60 = vrot.slane %v117_v50, 3 }
  0xdb   :  { %v209_v61 = vpop.permute.xlu0 %208  ;;  %v136_v62 = vrot.slane %v117_v50, 4  ;;  %v141_v63 = vrot.slane %v117_v50, 5  ;;  %v146_v4 = vrot.slane %v117_v50, 6  ;;  %v151_v6 = vrot.slane %v117_v50, 7 }
  0xdc   :  { %v254_v2 = vadd.f32 %v209_v61, %v201_v47  ;;  %v257_v3 = vmul.f32 0.21300554, %v255_v57  ;;  %v124_v8 = vsel %vm123_vm0, %v119_v58, %v120_v51  ;;  %v125_v9 = vsel %vm123_vm0, %v120_v51, %v119_v58 }
  0xdd   :  { %v129_v10 = vsel %vm128_vm1, %v126_v59, %v127_v53  ;;  %v130_v12 = vsel %vm128_vm1, %v127_v53, %v126_v59  ;;  %v134_v13 = vsel %vm133_vm2, %v131_v60, %v132_v54  ;;  %v135_v14 = vsel %vm133_vm2, %v132_v54, %v131_v60 }
  0xde   :  { %v256_v11 = vmul.f32 0.21300554, %v254_v2  ;;  %v621_v15 = vadd.f32 %v257_v3, %v253_v49  ;;  %v139_v17 = vsel %vm138_vm3, %v136_v62, %v137_v55  ;;  %v140_v18 = vsel %vm138_vm3, %v137_v55, %v136_v62 }
  0xdf   :  { %v144_v19 = vsel %vm143_vm4, %v141_v63, %v142_v56  ;;  %v145_v20 = vsel %vm143_vm4, %v142_v56, %v141_v63  ;;  %v149_v21 = vsel %vm148_vm5, %v146_v4, %v147_v0  ;;  %v154_v22 = vsel %vm153_vm6, %v151_v6, %v152_v1 }
  0xe0   :  { %v155_v23 = vsel %vm153_vm6, %v152_v1, %v151_v6  ;;  %v150_v16 = vsel %vm148_vm5, %v147_v0, %v146_v4  ;;  %v158_v24 = vadd.f32 %v130_v12, %v117_v50  ;;  %v159_v25 = vadd.f32 %v129_v10, %v118_v45 }
  0xe1   :  { %v164_v26 = vadd.f32 %v125_v9, %v124_v8  ;;  %v639_v27 = vadd.f32 %v256_v11, %v252_v7  ;;  %v156_v28 = vmul.f32 0.26601171, %v144_v19  ;;  %v172_v29 = vadd.f32 %v154_v22, %v134_v13 }
  0xe2   :  { %v173_v30 = vadd.f32 %v155_v23, %v135_v14  ;;  %v157_v31 = vmul.f32 0.26601171, %v145_v20  ;;  %v160_v32 = vmul.f32 0.0010283801, %v158_v24  ;;  %v161_v33 = vmul.f32 0.0010283801, %v159_v25 }
  0xe3   :  { %v165_v34 = vmul.f32 0.007598758, %v164_v26  ;;  %v178_v35 = vadd.f32 %v149_v21, %v139_v17  ;;  %v179_v36 = vadd.f32 %v150_v16, %v140_v18  ;;  %v168_v39 = vmul.f32 0.036000773, %v159_v25 }
  0xe4   :  { %v162_v37 = vadd.f32 %v160_v32, %v156_v28  ;;  %v163_v38 = vadd.f32 %v161_v33, %v157_v31  ;;  %v169_v40 = vmul.f32 0.036000773, %v158_v24  ;;  %v174_v41 = vmul.f32 0.10936069, %v172_v29 }
  0xe5   :  { %v175_v42 = vmul.f32 0.10936069, %v173_v30  ;;  %v260_v43 = vrot.slane %v639_v27, 1  ;;  %v261_v44 = vrot.slane %v621_v15, 1  ;;  %v264_v47 = vrot.slane %v639_v27, 2 }
  0xe6   :  { %v166_v45 = vadd.f32 %v165_v34, %v162_v37  ;;  %v167_v46 = vadd.f32 %v165_v34, %v163_v38  ;;  %v265_v48 = vrot.slane %v621_v15, 2  ;;  %v180_v49 = vmul.f32 0.21300554, %v178_v35 }
  0xe7   :  { %v181_v50 = vmul.f32 0.21300554, %v179_v36  ;;  %v268_v51 = vrot.slane %v639_v27, 3  ;;  %v262_v54 = vsel %vm123_vm0, %v260_v43, %v261_v44  ;;  %v269_v55 = vrot.slane %v621_v15, 3 }
  0xe8   :  { %v170_v52 = vadd.f32 %v168_v39, %v166_v45  ;;  %v171_v53 = vadd.f32 %v169_v40, %v167_v46  ;;  %v263_v56 = vsel %vm123_vm0, %v261_v44, %v260_v43  ;;  %v272_v57 = vrot.slane %v639_v27, 4 }
  0xe9   :  { %v273_v58 = vrot.slane %v621_v15, 4  ;;  %v276_v59 = vrot.slane %v639_v27, 5  ;;  %v266_v62 = vsel %vm128_vm1, %v264_v47, %v265_v48  ;;  %v277_v63 = vrot.slane %v621_v15, 5 }
  0xea   :  { %v176_v60 = vadd.f32 %v174_v41, %v170_v52  ;;  %v177_v61 = vadd.f32 %v175_v42, %v171_v53  ;;  %v267_v0 = vsel %vm128_vm1, %v265_v48, %v264_v47  ;;  %v280_v1 = vrot.slane %v639_v27, 6 }
  0xeb   :  { %v281_v2 = vrot.slane %v621_v15, 6  ;;  %v284_v3 = vrot.slane %v639_v27, 7  ;;  %v270_v7 = vsel %vm133_vm2, %v268_v51, %v269_v55  ;;  %v278_v8 = vsel %vm143_vm4, %v276_v59, %v277_v63 }
  0xec   :  { %v182_v4 = vadd.f32 %v180_v49, %v176_v60  ;;  %v183_v6 = vadd.f32 %v181_v50, %v177_v61  ;;  %v271_v9 = vsel %vm133_vm2, %v269_v55, %v268_v51  ;;  %v274_v10 = vsel %vm138_vm3, %v272_v57, %v273_v58 }
  0xed   :  { %v279_v11 = vsel %vm143_vm4, %v277_v63, %v276_v59  ;;  %v285_v12 = vrot.slane %v621_v15, 7  ;;  %v275_v13 = vsel %vm138_vm3, %v273_v58, %v272_v57  ;;  %v290_v14 = vadd.f32 %v267_v0, %v639_v27 }
  0xee   :  { %184 = vst [vmem:[#allocation6] sm:$0xff] %v182_v4  ;;  %185 = vst [vmem:[#allocation6 + $0x8] sm:$0xff] %v183_v6  ;;  %v291_v17 = vadd.f32 %v266_v62, %v621_v15  ;;  %v296_v18 = vadd.f32 %v263_v56, %v262_v54 }
  0xef   :  { %437 = shalt.err (!%p434_p6)
}
  0xf0   :  { %s438_s26 = scalar_lea.hbm %s717_s2, 256 }
  0xf1   :  { %p439_p7 = scmp.ne.s32.totalorder %s717_s2, %s438_s26  ;;  %p442_p8 = scmp.lt.u32.totalorder %s438_s26, %s717_s2 }
  0xf3   :  { %p444_p9 = pnand %p442_p8, %p439_p7 }
  0xf5   :  { %447 = shalt.err (!%p444_p9)
}
  0xf6   :  { %341 = dma.vmem_to_hbm [thread:$0]  %s336_s20, 256, %s717_s2, [#allocation7], %s477_s22, %s477_s22, %s478_s23   ;;  %v282_v15 = vsel %vm148_vm5, %v280_v1, %v281_v2  ;;  %v286_v19 = vsel %vm153_vm6, %v284_v3, %v285_v12  ;;  %v287_v20 = vsel %vm153_vm6, %v285_v12, %v284_v3  ;;  %v288_v21 = vmul.f32 0.26601171, %v278_v8 }
  0xf7   :  { %v283_v22 = vsel %vm148_vm5, %v281_v2, %v280_v1  ;;  %v289_v23 = vmul.f32 0.26601171, %v279_v11  ;;  %v292_v16 = vmul.f32 0.0010283801, %v290_v14  ;;  %v293_v24 = vmul.f32 0.0010283801, %v291_v17 }
  0xf8   :  { %v297_v25 = vmul.f32 0.007598758, %v296_v18  ;;  %v304_v28 = vadd.f32 %v286_v19, %v270_v7  ;;  %v305_v29 = vadd.f32 %v287_v20, %v271_v9  ;;  %v310_v30 = vadd.f32 %v282_v15, %v274_v10  ;;  %s491_s2 = smov [#allocation8]  }
  0xf9   :  { %v294_v26 = vadd.f32 %v292_v16, %v288_v21  ;;  %v295_v27 = vadd.f32 %v293_v24, %v289_v23  ;;  %v311_v31 = vadd.f32 %v283_v22, %v275_v13  ;;  %v300_v34 = vmul.f32 0.036000773, %v291_v17  ;;  %s347_s5 = sshll.u32 %s491_s2, 4  ;;  %s348_s5 = int_to_ptr.vmem [resolvable:$true] %s347_s5 }
  0xfa   :  { %v301_v35 = vmul.f32 0.036000773, %v290_v14  ;;  %v306_v38 = vmul.f32 0.10936069, %v304_v28  ;;  %v307_v39 = vmul.f32 0.10936069, %v305_v29  ;;  %p453_p11 = scmp.lt.s32.totalorder %s348_s5, %s348_s5 }
  0xfb   :  { %v298_v32 = vadd.f32 %v297_v25, %v294_v26  ;;  %v299_v33 = vadd.f32 %v297_v25, %v295_v27  ;;  %v312_v41 = vmul.f32 0.21300554, %v310_v30  ;;  %v313_v42 = vmul.f32 0.21300554, %v311_v31  ;;  %s448_s6 = scalar_lea.vmem %s348_s5, 256 }
  0xfc   :  { %p449_p10 = scmp.ne.s32.totalorder %s348_s5, %s448_s6  ;;  %p454_p12 = scmp.lt.s32.totalorder %s448_s6, %s448_s6 }
  0xfd   :  { %v302_v36 = vadd.f32 %v300_v34, %v298_v32  ;;  %v303_v37 = vadd.f32 %v301_v35, %v299_v33 }
  0xfe   :  { %p455_p13 = por %p454_p12, %p453_p11 }
  0xff   :  { %v308_v5 = vadd.f32 %v306_v38, %v302_v36  ;;  %v309_v40 = vadd.f32 %v307_v39, %v303_v37 }
 0x100   :  { %p456_p0 = pnand %p455_p13, %p449_p10 }
 0x101   :  { %v314_v43 = vadd.f32 %v312_v41, %v308_v5  ;;  %v315_v44 = vadd.f32 %v313_v42, %v309_v40 }
 0x103   :  { %316 = vst [vmem:[#allocation8] sm:$0xff] %v314_v43  ;;  %317 = vst [vmem:[#allocation8 + $0x8] sm:$0xff] %v315_v44 }
 0x104   :  { %459 = shalt.err (!%p456_p0)
}
 0x105   :  { %s460_s9 = scalar_lea.hbm %s718_s3, 256 }
 0x106   :  { %p461_p1 = scmp.ne.s32.totalorder %s718_s3, %s460_s9  ;;  %p464_p2 = scmp.lt.u32.totalorder %s460_s9, %s718_s3 }
 0x108   :  { %p466_p3 = pnand %p464_p2, %p461_p1 }
 0x10a   :  { %469 = shalt.err (!%p466_p3)
}
 0x10b   :  { %353 = dma.vmem_to_hbm [thread:$0]  %s348_s5, 256, %s718_s3, [#allocation7], %s477_s22, %s477_s22, %s478_s23  }
 0x10c   :  { %472 = dma.done.wait [#allocation4], 256  }
 0x10d   :  { %473 = vsyncadd [#allocation4], 4294967040 }
 0x10e   :  { %474 = dma.done.wait [#allocation7], 512  }
 0x10f   :  { %475 = vsyncadd [#allocation7], 4294966784 }
 0x110   :  { %363 = vsyncpa [#allocation3], 1 }
 0x111   :  { %364 = vsyncpa [#allocation4], 1 }
 0x112   :  { %365 = vsyncpa [#allocation7], 1 }

</bundles_post_ra>
